<compile_context>
chip_gen: v7x
topology: tpu7x:2x2x1
jax: 0.10.0
libtpu: 0.0.40
codegen_flags: <defaults>
</compile_context>

<pallas_src>
import functools

import jax
import jax.numpy as jnp
from jax.experimental import pallas as pl
from jax.experimental.pallas import tpu as pltpu


def _round_up(v, m):
    return ((v + m - 1) // m) * m


# ---------------------------------------------------------------------------
# Fused single-pass kernel: whole (1, C, T) slab resident in VMEM.
# ---------------------------------------------------------------------------
def _gln_fused_kernel(x_ref, w_ref, b_ref, o_ref, *, eps, inv_count, lane):
    C = x_ref.shape[1]
    Tb = x_ref.shape[2]
    xf = x_ref[...].astype(jnp.float32)                  # (1, C, Tb)

    n_full = Tb // lane
    rem = Tb - n_full * lane

    # ---- mean: chunked VPU accumulation, one XLU reduce per slab ----------
    if n_full > 0:
        ps = xf[:, :, 0:lane]
        for j in range(1, n_full):
            ps = ps + xf[:, :, j * lane:(j + 1) * lane]
        s = jnp.sum(ps, keepdims=True)                    # (1, 1, 1)
    else:
        s = jnp.zeros((1, 1, 1), jnp.float32)
    if rem:
        s = s + jnp.sum(xf[:, :, n_full * lane:], keepdims=True)
    mean = s * inv_count                                  # (1, 1, 1)

    # ---- variance: true two-pass (matches torch mean((x - mean)**2)) ------
    if n_full > 0:
        d = xf[:, :, 0:lane] - mean
        pv = d * d
        for j in range(1, n_full):
            d = xf[:, :, j * lane:(j + 1) * lane] - mean
            pv = pv + d * d
        v = jnp.sum(pv, keepdims=True)
    else:
        v = jnp.zeros((1, 1, 1), jnp.float32)
    if rem:
        d = xf[:, :, n_full * lane:] - mean
        v = v + jnp.sum(d * d, keepdims=True)
    var = v * inv_count

    inv_std = jax.lax.rsqrt(var + eps)
    w = w_ref[...].astype(jnp.float32).reshape(1, C, 1)
    b = b_ref[...].astype(jnp.float32).reshape(1, C, 1)
    a = w * inv_std                                       # (1, C, 1)
    c = b - a * mean                                      # (1, C, 1)
    o_ref[...] = (a * xf + c).astype(o_ref.dtype)


# ---------------------------------------------------------------------------
# Streaming pass 1: vreg-shaped (1, C, lane) partial sum / sum-of-squares.
# The output block is resident across the T ("arbitrary") axis and serves as
# the accumulator; only lane-aligned VPU adds run in the hot loop.
# ---------------------------------------------------------------------------
def _gln_stats_kernel(x_ref, sum_ref, ssq_ref, *, block_t, lane, nt_ps,
                      t_total, any_mask):
    s_idx = pl.program_id(1)
    t_idx = pl.program_id(2)

    @pl.when(t_idx == 0)
    def _init():
        sum_ref[...] = jnp.zeros_like(sum_ref)
        ssq_ref[...] = jnp.zeros_like(ssq_ref)

    n_chunks = block_t // lane
    g = s_idx * nt_ps + t_idx          # logical T-tile index (unclamped)

    def accumulate(masked):
        ps = sum_ref[...]              # (1, C, lane) f32
        pss = ssq_ref[...]
        for j in range(n_chunks):
            ch = x_ref[:, :, j * lane:(j + 1) * lane].astype(jnp.float32)
            if masked:
                col = (g * block_t + j * lane
                       + jax.lax.broadcasted_iota(jnp.int32, (1, 1, lane), 2))
                ch = jnp.where(col < t_total, ch, 0.0)
            ps = ps + ch
            pss = pss + ch * ch
        sum_ref[...] = ps
        ssq_ref[...] = pss

    if any_mask:
        needs = (g + 1) * block_t > t_total   # only boundary/padded tiles mask

        @pl.when(needs)
        def _masked():
            accumulate(True)

        @pl.when(jnp.logical_not(needs))
        def _unmasked():
            accumulate(False)
    else:
        accumulate(False)


# ---------------------------------------------------------------------------
# Streaming pass 2: y = a * x + c per lane-dense (1, C, tT) tile.
# ---------------------------------------------------------------------------
def _gln_norm_kernel(x_ref, a_ref, c_ref, o_ref):
    x = x_ref[...].astype(jnp.float32)                    # (1, C, tT)
    o_ref[...] = (a_ref[...] * x + c_ref[...]).astype(o_ref.dtype)


def _choose_block_t(T, C, itemsize, target_bytes, max_chunks=64):
    """Byte-targeted T tile: ~target_bytes of x per tile, multiple of 128."""
    bt = _round_up(max(1, target_bytes // (C * itemsize)), 128)
    bt = max(128, min(bt, max_chunks * 128))
    if bt >= T:
        return T                        # full-extent tile: always legal
    return bt


def global_layer_norm(x, weight=None, bias=None, eps=1e-05,
                      block_t_stats=None, block_t_norm=None, allow_fused=True):
    """x: (N, C, T); weight, bias: (C, 1) (or None). Returns (N, C, T)."""
    N, C, T = x.shape
    dtype = x.dtype
    isz = jnp.dtype(dtype).itemsize
    if weight is None:
        weight = jnp.ones((C, 1), jnp.float32)
    if bias is None:
        bias = jnp.zeros((C, 1), jnp.float32)
    weight = weight.reshape(C, 1)
    bias = bias.reshape(C, 1)
    inv_count = 1.0 / float(C * T)
    eps = float(eps)

    # ----------------- fused single-pass resident-slab path ----------------
    # 2 in + 2 out buffers + f32 slab + f32 result temp, plus slack.
    fused_bytes = C * T * (4 * isz + 8) + 2 * C * 128 * 4 + (1 << 20)
    if (allow_fused and block_t_stats is None and block_t_norm is None
            and fused_bytes <= (28 << 20) and (T + 127) // 128 <= 256):
        kern = functools.partial(_gln_fused_kernel, eps=eps,
                                 inv_count=inv_count, lane=128)
        return pl.pallas_call(
            kern,
            out_shape=jax.ShapeDtypeStruct((N, C, T), dtype),
            grid_spec=pltpu.PrefetchScalarGridSpec(
                num_scalar_prefetch=0,
                grid=(N,),
                in_specs=[
                    pl.BlockSpec((1, C, T), lambda n: (n, 0, 0)),
                    pl.BlockSpec((C, 1), lambda n: (0, 0)),
                    pl.BlockSpec((C, 1), lambda n: (0, 0)),
                ],
                out_specs=pl.BlockSpec((1, C, T), lambda n: (n, 0, 0)),
            ),
            compiler_params=pltpu.CompilerParams(
                dimension_semantics=("parallel",),
                vmem_limit_bytes=48 << 20),
        )(x, weight, bias)

    # ------------------------ streaming two-pass path ----------------------
    # Pass 1 is input-only -> larger byte target than pass 2 (read + write).
    bt1 = block_t_stats if block_t_stats is not None else \
        _choose_block_t(T, C, isz, 3 << 20)
    bt2 = block_t_norm if block_t_norm is not None else \
        _choose_block_t(T, C, isz, 2 << 20)

    lane1 = 128 if (bt1 % 128 == 0) else bt1
    nt1 = pl.cdiv(T, bt1)
    # Split the T reduction across two grid slots when N == 1 so that v7x
    # megacore can use both TensorCores for the stats pass (harmless on
    # single-core chips).
    n_splits = 2 if (N == 1 and nt1 >= 4) else 1
    nt_ps = pl.cdiv(nt1, n_splits)
    any_mask = (n_splits * nt_ps * bt1) > T

    stats_kern = functools.partial(
        _gln_stats_kernel, block_t=bt1, lane=lane1, nt_ps=nt_ps,
        t_total=T, any_mask=any_mask)

    def x_stats_map(n, s, t):
        # Clamp fully-padded split tiles to a valid block (their data is
        # masked to zero in-kernel via the logical column index).
        return (n, 0, jnp.minimum(s * nt_ps + t, nt1 - 1))

    sums, ssqs = pl.pallas_call(
        stats_kern,
        out_shape=(
            jax.ShapeDtypeStruct((N * n_splits, C, lane1), jnp.float32),
            jax.ShapeDtypeStruct((N * n_splits, C, lane1), jnp.float32),
        ),
        grid_spec=pltpu.PrefetchScalarGridSpec(
            num_scalar_prefetch=0,
            grid=(N, n_splits, nt_ps),
            in_specs=[pl.BlockSpec((1, C, bt1), x_stats_map)],
            out_specs=(
                pl.BlockSpec((1, C, lane1),
                             lambda n, s, t: (n * n_splits + s, 0, 0)),
                pl.BlockSpec((1, C, lane1),
                             lambda n, s, t: (n * n_splits + s, 0, 0)),
            ),
        ),
        compiler_params=pltpu.CompilerParams(
            dimension_semantics=("parallel", "parallel", "arbitrary"),
            vmem_limit_bytes=32 << 20),
    )(x)

    # Tiny JAX combine: fold the lane/channel partials and the per-half
    # splits, then form the per-batch folded affine coefficients.
    tot_sum = jnp.sum(sums.reshape(N, -1), axis=1)        # (N,)
    tot_ssq = jnp.sum(ssqs.reshape(N, -1), axis=1)        # (N,)
    mean = tot_sum * inv_count
    var = jnp.maximum(tot_ssq * inv_count - mean * mean, 0.0)
    inv_std = jax.lax.rsqrt(var + eps)
    wf = weight.astype(jnp.float32).reshape(1, C, 1)
    bf = bias.astype(jnp.float32).reshape(1, C, 1)
    a = wf * inv_std.reshape(N, 1, 1)                     # (N, C, 1)
    c = bf - a * mean.reshape(N, 1, 1)                    # (N, C, 1)

    nt2 = pl.cdiv(T, bt2)
    out = pl.pallas_call(
        _gln_norm_kernel,
        out_shape=jax.ShapeDtypeStruct((N, C, T), dtype),
        grid_spec=pltpu.PrefetchScalarGridSpec(
            num_scalar_prefetch=0,
            grid=(N, nt2),
            in_specs=[
                pl.BlockSpec((1, C, bt2), lambda n, t: (n, 0, t)),
                pl.BlockSpec((1, C, 1), lambda n, t: (n, 0, 0)),
                pl.BlockSpec((1, C, 1), lambda n, t: (n, 0, 0)),
            ],
            out_specs=pl.BlockSpec((1, C, bt2), lambda n, t: (n, 0, t)),
        ),
        compiler_params=pltpu.CompilerParams(
            dimension_semantics=("parallel", "parallel"),
            vmem_limit_bytes=32 << 20),
    )(x, a, c)
    return out


def global_layer_norm_ref(x, weight, bias, eps=1e-05):
    mean = jnp.mean(x, axis=(1, 2), keepdims=True)
    var = jnp.mean((x - mean) ** 2, axis=(1, 2), keepdims=True)
    return weight[None] * (x - mean) / jnp.sqrt(var + eps) + bias[None]


if __name__ == "__main__":
    key = jax.random.PRNGKey(0)
    k1, k2, k3, k4, k5 = jax.random.split(key, 5)

    # Test 1: tiny shape -> fused single-pass resident-slab path.
    N, C, T = 2, 4, 16
    x = jax.random.normal(k1, (N, C, T), dtype=jnp.float32)
    w = 1.0 + 0.1 * jax.random.normal(k2, (C, 1), dtype=jnp.float32)
    b = 0.1 * jax.random.normal(k3, (C, 1), dtype=jnp.float32)
    out = jax.block_until_ready(global_layer_norm(x, w, b))
    ref = global_layer_norm_ref(x, w, b)
    assert out.shape == (N, C, T)
    assert jnp.allclose(out, ref, atol=1e-5, rtol=1e-5), "mismatch (fused)"

    # Test 2: streaming two-pass path with a masked partial tail tile.
    N2, C2, T2 = 2, 8, 320
    x2 = jax.random.normal(k4, (N2, C2, T2), dtype=jnp.float32)
    w2 = 1.0 + 0.05 * jax.random.normal(k2, (C2, 1), dtype=jnp.float32)
    b2 = 0.05 * jax.random.normal(k3, (C2, 1), dtype=jnp.float32)
    out2 = jax.block_until_ready(global_layer_norm(
        x2, w2, b2, allow_fused=False, block_t_stats=128, block_t_norm=128))
    ref2 = global_layer_norm_ref(x2, w2, b2)
    assert out2.shape == (N2, C2, T2)
    assert jnp.allclose(out2, ref2, atol=1e-4, rtol=1e-4), "mismatch (stream)"

    # Test 3: N=1 -> stats pass split into two parallel grid slots (v7x
    # megacore), exercising the partial tail mask and a fully-padded tile.
    N3, C3, T3 = 1, 8, 600
    x3 = jax.random.normal(k5, (N3, C3, T3), dtype=jnp.float32)
    w3 = jnp.ones((C3, 1), jnp.float32)
    b3 = jnp.zeros((C3, 1), jnp.float32)
    out3 = jax.block_until_ready(global_layer_norm(
        x3, w3, b3, allow_fused=False, block_t_stats=128, block_t_norm=128))
    ref3 = global_layer_norm_ref(x3, w3, b3)
    assert out3.shape == (N3, C3, T3)
    assert jnp.allclose(out3, ref3, atol=1e-4, rtol=1e-4), "mismatch (split)"

    print("KERNEL_OK")
</pallas_src>

<mosaic_0001>
module attributes {stable_mosaic.version = 11 : i64} {
  func.func @_gln_fused_kernel(%arg0: i32, %arg1: memref<1x4x16xf32, #tpu.memory_space<vmem>>, %arg2: memref<4x1xf32, #tpu.memory_space<vmem>>, %arg3: memref<4x1xf32, #tpu.memory_space<vmem>>, %arg4: memref<1x4x16xf32, #tpu.memory_space<vmem>>) attributes {dimension_semantics = [#tpu.dimension_semantics<parallel>], iteration_bounds = array<i64: 2>, scalar_prefetch = 0 : i64, scratch_operands = 0 : i64, tpu.core_type = #tpu.core_type<tc>, window_params = [{transform_indices = @transform_0, window_bounds = array<i64: 1, 4, 16>}, {pipeline_mode = #tpu.pipeline_mode<synchronous>, transform_indices = @transform_1, window_bounds = array<i64: 4, 1>}, {pipeline_mode = #tpu.pipeline_mode<synchronous>, transform_indices = @transform_2, window_bounds = array<i64: 4, 1>}, {transform_indices = @transform_3, window_bounds = array<i64: 1, 4, 16>}]} {
    %c0 = arith.constant 0 : index
    %c0_0 = arith.constant 0 : index
    %c0_1 = arith.constant 0 : index
    %0 = vector.load %arg1[%c0, %c0_0, %c0_1] : memref<1x4x16xf32, #tpu.memory_space<vmem>>, vector<1x4x16xf32>
    %cst = arith.constant 0.000000e+00 : f32
    %1 = vector.broadcast %cst : f32 to vector<1x1x1xf32>
    %2 = vector.shape_cast %0 : vector<1x4x16xf32> to vector<1x1x4x16xf32>
    %cst_2 = arith.constant dense<0.000000e+00> : vector<1xf32>
    %3 = vector.multi_reduction <add>, %2, %cst_2 [1, 2, 3] : vector<1x1x4x16xf32> to vector<1xf32>
    %4 = vector.shape_cast %3 : vector<1xf32> to vector<1x1x1x1xf32>
    %5 = vector.extract %4[0, 0, 0, 0] : f32 from vector<1x1x1x1xf32>
    %6 = vector.broadcast %5 : f32 to vector<1x1x1xf32>
    %7 = arith.addf %1, %6 : vector<1x1x1xf32>
    %cst_3 = arith.constant 1.562500e-02 : f32
    %8 = vector.broadcast %cst_3 : f32 to vector<1x1x1xf32>
    %9 = arith.mulf %7, %8 : vector<1x1x1xf32>
    %cst_4 = arith.constant 0.000000e+00 : f32
    %10 = vector.broadcast %cst_4 : f32 to vector<1x1x1xf32>
    %11 = vector.broadcast %9 : vector<1x1x1xf32> to vector<1x4x16xf32>
    %12 = arith.subf %0, %11 : vector<1x4x16xf32>
    %13 = arith.mulf %12, %12 : vector<1x4x16xf32>
    %14 = vector.shape_cast %13 : vector<1x4x16xf32> to vector<1x1x4x16xf32>
    %cst_5 = arith.constant dense<0.000000e+00> : vector<1xf32>
    %15 = vector.multi_reduction <add>, %14, %cst_5 [1, 2, 3] : vector<1x1x4x16xf32> to vector<1xf32>
    %16 = vector.shape_cast %15 : vector<1xf32> to vector<1x1x1x1xf32>
    %17 = vector.extract %16[0, 0, 0, 0] : f32 from vector<1x1x1x1xf32>
    %18 = vector.broadcast %17 : f32 to vector<1x1x1xf32>
    %19 = arith.addf %10, %18 : vector<1x1x1xf32>
    %cst_6 = arith.constant 1.562500e-02 : f32
    %20 = vector.broadcast %cst_6 : f32 to vector<1x1x1xf32>
    %21 = arith.mulf %19, %20 : vector<1x1x1xf32>
    %cst_7 = arith.constant 9.99999974E-6 : f32
    %22 = vector.broadcast %cst_7 : f32 to vector<1x1x1xf32>
    %23 = arith.addf %21, %22 : vector<1x1x1xf32>
    %24 = math.rsqrt %23 : vector<1x1x1xf32>
    %c0_8 = arith.constant 0 : index
    %c0_9 = arith.constant 0 : index
    %25 = vector.load %arg2[%c0_8, %c0_9] : memref<4x1xf32, #tpu.memory_space<vmem>>, vector<4x1xf32>
    %26 = vector.shape_cast %25 : vector<4x1xf32> to vector<1x4x1xf32>
    %c0_10 = arith.constant 0 : index
    %c0_11 = arith.constant 0 : index
    %27 = vector.load %arg3[%c0_10, %c0_11] : memref<4x1xf32, #tpu.memory_space<vmem>>, vector<4x1xf32>
    %28 = vector.shape_cast %27 : vector<4x1xf32> to vector<1x4x1xf32>
    %29 = vector.broadcast %24 : vector<1x1x1xf32> to vector<1x4x1xf32>
    %30 = arith.mulf %26, %29 : vector<1x4x1xf32>
    %31 = vector.broadcast %9 : vector<1x1x1xf32> to vector<1x4x1xf32>
    %32 = arith.mulf %30, %31 : vector<1x4x1xf32>
    %33 = arith.subf %28, %32 : vector<1x4x1xf32>
    %34 = vector.broadcast %30 : vector<1x4x1xf32> to vector<1x4x16xf32>
    %35 = arith.mulf %34, %0 : vector<1x4x16xf32>
    %36 = vector.broadcast %33 : vector<1x4x1xf32> to vector<1x4x16xf32>
    %37 = arith.addf %35, %36 : vector<1x4x16xf32>
    %c0_12 = arith.constant 0 : index
    %c0_13 = arith.constant 0 : index
    %c0_14 = arith.constant 0 : index
    %38 = vector.load %arg4[%c0_12, %c0_13, %c0_14] : memref<1x4x16xf32, #tpu.memory_space<vmem>>, vector<1x4x16xf32>
    tpu.vector_store %arg4[%c0_12, %c0_13, %c0_14], %37 {strides = array<i32>} : memref<1x4x16xf32, #tpu.memory_space<vmem>>, vector<1x4x16xf32>,
    return
  }
  func.func @transform_0(%arg0: i32) -> (i32, i32, i32) {
    %c0_i32 = arith.constant 0 : i32
    %c0_i32_0 = arith.constant 0 : i32
    %c0_i32_1 = arith.constant 0 : i32
    return %arg0, %c0_i32, %c0_i32_0 : i32, i32, i32
  }
  func.func @transform_1(%arg0: i32) -> (i32, i32) {
    %c0_i32 = arith.constant 0 : i32
    %c0_i32_0 = arith.constant 0 : i32
    %c0_i32_1 = arith.constant 0 : i32
    return %c0_i32, %c0_i32_0 : i32, i32
  }
  func.func @transform_2(%arg0: i32) -> (i32, i32) {
    %c0_i32 = arith.constant 0 : i32
    %c0_i32_0 = arith.constant 0 : i32
    %c0_i32_1 = arith.constant 0 : i32
    return %c0_i32, %c0_i32_0 : i32, i32
  }
  func.func @transform_3(%arg0: i32) -> (i32, i32, i32) {
    %c0_i32 = arith.constant 0 : i32
    %c0_i32_0 = arith.constant 0 : i32
    %c0_i32_1 = arith.constant 0 : i32
    return %arg0, %c0_i32, %c0_i32_0 : i32, i32, i32
  }
}

</mosaic_0001>

<bundles_post_ra>
// kernel: tpu_custom_call.1
= control target key start
LH: loop header
LB: loop body
LE: loop exit
PB: predicated region body
PF: predicated region fallthrough
CT: control target
= control target key end

     0   :  { %8 = vsyncpa [#allocation3], 0  ;;  %s542_s0 = inlined_call_operand.vmem [shape: f32[2,4,16], index: 0, kind: input, shape index: {}]   ;;  %s543_s1 = inlined_call_operand.vmem [shape: f32[4,1], index: 1, kind: input, shape index: {}]   ;;  %s544_s2 = inlined_call_operand.vmem [shape: f32[4,1], index: 2, kind: input, shape index: {}]   ;;  %s545_s3 = inlined_call_operand.hbm [shape: f32[2,4,16], index: 3, kind: output, shape index: {}]  }
   0x1   :  { %10 = vsyncpa [#allocation3 + $0x1], 0  ;;  %s433_s12 = smov 0   ;;  %s435_s13 = smov 0  }
   0x2   :  { %s437_s14 = smov 0   ;;  %s439_s15 = smov 0  }
   0x3 LB: > { %s454_s16 = sadd.s32 4294967295, %s409_s15   ;;  %s289_s17 = sadd.s32 4294967294, %s409_s15   ;;  %s409_s15 = sphi %s439_s15, %s551_s15   ;;  %s405_s14 = sphi %s437_s14, %s550_s14   ;;  %s401_s13 = sphi %s435_s13, %s549_s13   ;;  %s397_s12 = sphi %s433_s12, %s548_s12  }
   0x4   : > { %s458_s18 = sadd.s32 1, %s409_s15   ;;  %s91_s19 = sadd.s32 1, %s405_s14 }
   0x5   : > { %s88_s20 = ssub.s32 %s409_s15, %s458_s18  ;;  %p101_p0 = scmp.ne.s32.totalorder %s405_s14, %s401_s13 }
   0x6   : > { %p89_p1 = scmp.eq.s32.totalorder %s88_s20, 0  ;;  %p102_p2 = scmp.eq.s32.totalorder %s454_s16, 1 }
   0x7   : > { %p107_p3 = scmp.ne.s32.totalorder %s401_s13, %s397_s12  ;;  %p108_p4 = scmp.eq.s32.totalorder %s289_s17, 1 }
   0x8   : > { %s469_s21 = scalar_select %p89_p1, %s405_s14, %s91_s19  }
   0x9   : > { %p471_p5 = por %p102_p2, %p101_p0  ;;  %p475_p6 = por %p108_p4, %p107_p3 }
   0xa   : > { %p292_p7 = scmp.ge.s32.totalorder %s409_s15, 1  ;;  %p139_p8 = scmp.lt.s32.totalorder %s409_s15, 3 }
   0xc   : > { %p140_p9 = pnand %p292_p7, %p139_p8 }
   0xd   : > { %p162_p10 = scmp.lt.s32.totalorder (!%p140_p9), %s454_s16, 1  ;;  %vm167_vm0 = vcmask (!%p140_p9), 125952   ;;  %v411_v14 = vmov (!%p140_p9), 0   ;;  %v198_v25 = vld [vmem:[%s543_s1] sm:$0xf] (!%p140_p9)  ;;  %s159_s8 = sand.u32 (!%p140_p9), 1, %s401_s13  }
   0xe   : > { %143 = sbr.rel (%p140_p9) target bundleno = 609 (0x261), region = 32  ;;  %343 = vset.pattern.permute.xlu1 (!%p140_p9), %v411_v14  ;;  %344 = vset.pattern.permute.xlu0 (!%p140_p9), %v411_v14  ;;  %v199_v28 = vld [vmem:[%s544_s2] sm:$0xf] (!%p140_p9)  ;;  %s293_s9 = sshll.u32 (!%p140_p9), %s159_s8, 2 }
   0xf   : > { %s296_s10 = sshll.u32 (!%p140_p9), %s454_s16, 6  ;;  %s161_s11 = scalar_lea.vmem (!%p140_p9), [#allocation2], %s293_s9 }
  0x10   : > { %s230_s17 = sshll.u32 (!%p140_p9), %s161_s11, 4  ;;  %s501_s17 = int_to_ptr.vmem [resolvable:$true] %s230_s17 }
  0x11   : > { %s347_s26 = scalar_lea.vmem (!%p140_p9), %s501_s17, 64 }
  0x12   : > { %p348_p11 = scmp.ne.s32.totalorder (!%p140_p9), %s501_s17, %s347_s26 }
  0x14   : > { %p349_p12 = pnand (!%p140_p9), %p348_p11, %p471_p5 }
  0x15   : > { %s163_s24 = scalar_select %p162_p10, %s454_s16, 1 }
  0x16   : > { %p350_p13 = pneg %p349_p12  ;;  %s412_s16 = smov [#allocation2]  }
  0x17   : > { %s294_s25 = sshll.u32 %s163_s24, 2  ;;  %s499_s24 = scalar_lea.hbm %s545_s3, %s296_s10 }
  0x18   : > { %s165_s28 = scalar_lea.vmem %s542_s0, %s294_s25  ;;  %s217_s25 = scalar_lea.sflag [#allocation3], %s159_s8 }
  0x19   : > { %v166_v0 = vld [vmem:[%s165_s28] sm:$0xf]  ;;  %s351_s27 = sshll.u32 %s412_s16, 4  ;;  %s352_s27 = int_to_ptr.vmem [resolvable:$false] %s351_s27 }
  0x1a   : > { %v168_v1 = vsel %vm167_vm0, %v166_v0, 0.0  ;;  %s353_s28 = scalar_lea.vmem %s352_s27, 128  ;;  %p354_p0 = scmp.lt.s32.totalorder %s501_s17, %s352_s27 }
  0x1b   : > { %169 = vadd.xlane.f32.xlu0 %v168_v1  ;;  %p355_p1 = scmp.lt.s32.totalorder %s353_s28, %s347_s26 }
  0x1d   : > { %p356_p2 = por %p355_p1, %p354_p0 }
  0x1f   : > { %p357_p3 = pnand %p356_p2, %p350_p13 }
  0xa8   : > { %v170_v2 = vpop.xlane.xlu0 %169 }
  0xa9   : > { %v171_v3 = vrot.slane %v170_v2, 4 }
  0xab   : > { %v172_v4 = vadd.f32 %v171_v3, %v170_v2 }
  0xad   : > { %v173_v5 = vrot.slane %v172_v4, 2 }
  0xaf   : > { %v174_v6 = vadd.f32 %v173_v5, %v172_v4 }
  0xb1   : > { %v175_v7 = vrot.slane %v174_v6, 1 }
  0xb3   : > { %v176_v8 = vadd.f32 %v175_v7, %v174_v6 }
  0xb5   : > { %299 = vpush %v176_v8 }
  0xe6   : > { %s300_s29 = spop %299 }
  0xe7   : > { %v178_v9 = vstv %s300_s29 }
  0xe8   : > { %v180_v10 = vmul.f32 0.015625, %v178_v9 }
  0xea   : > { %v181_v11 = vsub.f32 %v166_v0, %v180_v10 }
  0xec   : > { %v182_v12 = vmul.f32 %v181_v11, %v181_v11 }
  0xee   : > { %v183_v13 = vsel %vm167_vm0, %v182_v12, 0.0 }
  0xef   : > { %184 = vadd.xlane.f32.xlu0 %v183_v13 }
 0x17c   : > { %v185_v15 = vpop.xlane.xlu0 %184 }
 0x17d   : > { %v186_v16 = vrot.slane %v185_v15, 4 }
 0x17f   : > { %v187_v17 = vadd.f32 %v186_v16, %v185_v15 }
 0x181   : > { %v188_v18 = vrot.slane %v187_v17, 2 }
 0x183   : > { %v189_v19 = vadd.f32 %v188_v18, %v187_v17 }
 0x185   : > { %v190_v20 = vrot.slane %v189_v19, 1 }
 0x187   : > { %v191_v21 = vadd.f32 %v190_v20, %v189_v19 }
 0x189   : > { %301 = vpush %v191_v21 }
 0x1ba   : > { %s302_s30 = spop %301 }
 0x1bb   : > { %v193_v22 = vstv %s302_s30 }
 0x1bc   : > { %v195_v23 = vmul.f32 0.015625, %v193_v22 }
 0x1be   : > { %v196_v24 = vadd.f32 1e-05, %v195_v23 }
 0x1c0   : > { %345 = vrsqrt.f32 %v196_v24 }
 0x1ca   : > { %v346_v26 = vpop.eup %345 }
 0x1cb   : > { %v200_v27 = vmul.f32 %v346_v26, %v198_v25 }
 0x1cd   : > { %205 = vperm.xlu1 %343, %v200_v27   ;;  %v201_v29 = vmul.f32 %v200_v27, %v180_v10 }
 0x1cf   : > { %v202_v30 = vsub.f32 %v199_v28, %v201_v29 }
 0x1d1   : > { %211 = vperm.xlu1 %343, %v202_v30  }
 0x24c   : > { %v206_v31 = vpop.permute.xlu1 %205 }
 0x24d   : > { %v208_v32 = vmul.f32 %v206_v31, %v166_v0 }
 0x250   : > { %v212_v33 = vpop.permute.xlu1 %211 }
 0x251   : > { %v214_v34 = vadd.f32 %v212_v33, %v208_v32 }
 0x253   : > { %215 = vst.msk [vmem:[%s161_s11] sm:$0xf] %vm167_vm0, %v214_v34 }
 0x254   : > { %360 = shalt.err (!%p357_p3)
}
 0x255   : > { %s361_s29 = scalar_lea.hbm %s499_s24, 64  ;;  %s365_s5 = scalar_lea.hbm %s545_s3, 128 }
 0x256   : > { %p362_p4 = scmp.ne.s32.totalorder %s499_s24, %s361_s29  ;;  %p366_p9 = scmp.lt.u32.totalorder %s499_s24, %s545_s3 }
 0x257   : > { %p367_p10 = scmp.lt.u32.totalorder %s365_s5, %s361_s29  ;;  %p369_p12 = scmp.lt.u32.totalorder %s361_s29, %s499_s24 }
 0x258   : > { %p363_p7 = pnand %p362_p4, %p471_p5 }
 0x259   : > { %p368_p11 = por %p367_p10, %p366_p9 }
 0x25a   : > { %p364_p8 = pneg %p363_p7 }
 0x25b   : > { %p370_p13 = por %p369_p12, %p368_p11 }
 0x25d   : > { %p371_p0 = pnand %p370_p13, %p364_p8 }
 0x25f   : > { %374 = shalt.err (!%p371_p0)
}
 0x260   : > { %303 = dma.vmem_to_hbm [thread:$0]  (%p471_p5), %s501_s17, 64, %s499_s24, %s217_s25  }
 0x261 PF: > { %p309_p1 = scmp.ge.s32.totalorder %s409_s15, 2  ;;  %s242_s8 = sand.u32 1, %s397_s12  }
 0x262   : > { %s243_s9 = scalar_lea.sflag [#allocation3], %s242_s8 }
 0x263   : > { %p306_p2 = pnand %p309_p1, %p475_p6 }
 0x265   : > { %392 = dma.done.wait (!%p306_p2), %s243_s9, 64  }
 0x266   : > { %394 = vsyncadd (!%p306_p2), %s243_s9, 4294967232  ;;  %p13_p3 = scmp.ge.s32.totalorder %s458_s18, 4   ;;  %s548_s12 = smov %s401_s13 }
 0x267   : > { %s549_s13 = smov %s405_s14  ;;  %s550_s14 = smov %s469_s21 }
 0x268   : > { %s551_s15 = smov %s458_s18  ;;  %15 = sbr.rel (!%p13_p3) target bundleno = 3 (0x3), region = 67 }
 0x26f   :  { %248 = vsyncpa [#allocation3], 1 }
 0x270   :  { %250 = vsyncpa [#allocation3 + $0x1], 1 }

</bundles_post_ra>
